<compile_context>
chip_gen: v7x
topology: tpu7x:2x2x1
jax: 0.10.0
libtpu: 0.0.40
codegen_flags: <defaults>
</compile_context>

<pallas_src>
import jax
import jax.numpy as jnp
from jax import lax
from jax.experimental import pallas as pl
from jax.experimental.pallas import tpu as pltpu


def _rnn_recurrence_kernel(x_ref, wc_ref, wi_ref, h_ref, coef_s, inp_s):
    # x_ref  : (t_chunk*bn, I+1)  ones-augmented input rows, ordered (t, n) for this chunk
    # wc_ref : (I+1, H)           [W_ih ; diag(W_h)]  ->  coef_t = x_t @ W_ih + diag(W_h)
    # wi_ref : (I+1, H)           [W_i.T ; 0]         ->  inp_t  = x_t @ W_i.T
    # h_ref  : (bn, H)            resident output block; carries hidden state across chunks
    # coef_s, inp_s : (t_chunk*bn, H) VMEM scratch holding the per-chunk projections
    bn = h_ref.shape[0]
    t_chunk = x_ref.shape[0] // bn
    c = pl.program_id(1)  # time-chunk axis (innermost, 'arbitrary')

    @pl.when(c == 0)
    def _():
        h_ref[...] = jnp.zeros_like(h_ref)

    # h-independent projections for the whole chunk: MXU work that is off the
    # serial recurrence chain (overlaps with the next chunk's DMA).
    xa = x_ref[...]
    coef_s[...] = jnp.dot(xa, wc_ref[...], preferred_element_type=jnp.float32)
    inp_s[...] = jnp.dot(xa, wi_ref[...], preferred_element_type=jnp.float32)

    def step(t, h):
        # h_new = (diag(W_h) + x_t @ W_ih) * h + x_t @ W_i.T
        lo = pl.multiple_of(t * bn, bn)
        return coef_s[pl.ds(lo, bn), :] * h + inp_s[pl.ds(lo, bn), :]

    h_ref[...] = lax.fori_loop(0, t_chunk, step, h_ref[...],
                               unroll=min(8, t_chunk))


def _choose_t_chunk(T, bn, H, ip1, t_chunk, budget_bytes):
    """Pick a chunk length that divides T, keeps the double-buffered VMEM
    footprint under `budget_bytes`, and leaves >=~4 grid steps for pipelining."""
    if t_chunk is not None:
        assert T % t_chunk == 0, "t_chunk must divide the sequence length"
        return t_chunk
    lanes = 128
    x_row = ((ip1 + lanes - 1) // lanes) * lanes * 4      # padded bytes per x row (f32)
    s_row = ((H + lanes - 1) // lanes) * lanes * 4        # padded bytes per scratch row
    per_t = bn * (2 * x_row + 2 * s_row)                  # x double-buffer + 2 scratches
    cap = max(1, budget_bytes // per_t)
    if T >= 4:
        cap = min(cap, max(1, T // 4))                    # aim for >=4 pipelined grid steps
    best = 1
    for d in range(1, T + 1):
        if T % d == 0 and d <= cap and (d * bn) % 8 == 0:
            best = max(best, d)
    if (best * bn) % 8 != 0:
        best = T                                          # full-extent block is always legal
    return best


def rnn_forward(x, W_h, W_ih, W_i, *, t_chunk=None, batch_block=None,
                vmem_budget_bytes=8 * 1024 * 1024):
    """x: (N, input_size, seq_len) float, matching the PyTorch call convention.

    Returns (o, h) with o == h, both (N, hidden_size) float32."""
    N, I, T = x.shape
    H = W_h.shape[0]
    f32 = jnp.float32

    # --- batch blocking: leading 'parallel' grid axis (feeds v7x's 2 TensorCores) ---
    if batch_block is None:
        bn = N // 2 if (N % 16 == 0) else N
    else:
        bn = batch_block
    assert N % bn == 0, "batch_block must divide N"
    nb = N // bn
    assert nb == 1 or bn % 8 == 0, "batch blocks must be sublane-aligned (multiple of 8)"

    # --- fold diag(W_h) into the coefficient projection via a ones input channel ---
    wh_diag = jnp.diagonal(W_h).astype(f32)                                   # (H,)
    w_coef = jnp.concatenate([W_ih.astype(f32), wh_diag[None, :]], axis=0)    # (I+1, H)
    w_inp = jnp.concatenate([W_i.T.astype(f32), jnp.zeros((1, H), f32)], axis=0)

    # --- time-major, batch-blocked, ones-augmented input: rows ordered (b, t, n) ---
    ones = jnp.ones((N, 1, T), f32)
    x_aug = jnp.concatenate([x.astype(f32), ones], axis=1)                    # (N, I+1, T)
    x_rows = (x_aug.transpose(0, 2, 1)                                        # (N, T, I+1)
                    .reshape(nb, bn, T, I + 1)
                    .transpose(0, 2, 1, 3)                                    # (nb, T, bn, I+1)
                    .reshape(nb * T * bn, I + 1))                             # contiguous chunks

    # --- chunk length from a per-generation-safe VMEM budget ---
    t_chunk = _choose_t_chunk(T, bn, H, I + 1, t_chunk, vmem_budget_bytes)
    n_chunks = T // t_chunk
    assert (t_chunk * bn) % 8 == 0 or (nb == 1 and t_chunk == T), (
        "t_chunk * batch_block must be a multiple of 8 (or a full-extent block)")

    grid_spec = pltpu.PrefetchScalarGridSpec(
        num_scalar_prefetch=0,
        grid=(nb, n_chunks),
        in_specs=[
            # contiguous (t_chunk*bn, I+1) slab of x rows for (batch block b, chunk c)
            pl.BlockSpec((t_chunk * bn, I + 1),
                         lambda b, c: (b * n_chunks + c, 0)),
            # small weights, resident (constant block index -> fetched once)
            pl.BlockSpec((I + 1, H), lambda b, c: (0, 0)),
            pl.BlockSpec((I + 1, H), lambda b, c: (0, 0)),
        ],
        # output block resident across the time axis: carries the hidden state
        out_specs=pl.BlockSpec((bn, H), lambda b, c: (b, 0)),
        scratch_shapes=[
            pltpu.VMEM((t_chunk * bn, H), jnp.float32),   # coef chunk
            pltpu.VMEM((t_chunk * bn, H), jnp.float32),   # inp chunk
        ],
    )

    h = pl.pallas_call(
        _rnn_recurrence_kernel,
        out_shape=jax.ShapeDtypeStruct((N, H), jnp.float32),
        grid_spec=grid_spec,
        compiler_params=pltpu.CompilerParams(
            dimension_semantics=("parallel", "arbitrary"),
            vmem_limit_bytes=32 * 1024 * 1024,
        ),
    )(x_rows, w_coef, w_inp)

    # PyTorch module returns (o, h) with o == h.
    return h, h


def rnn_reference(x, W_h, W_ih, W_i):
    """Pure-JAX reference mirroring the PyTorch loop exactly."""
    N, I, T = x.shape
    H = W_h.shape[0]
    h = jnp.zeros((N, H), jnp.float32)
    wh_diag = jnp.diagonal(W_h)
    for t in range(T):
        x_t = x[:, :, t].astype(jnp.float32)
        h = wh_diag[None, :] * h + (x_t @ W_ih) * h + (x_t @ W_i.T)
    return h, h


if __name__ == "__main__":
    scale = 0.001
    key = jax.random.PRNGKey(0)

    def run_case(N, I, H, T, t_chunk):
        ks = jax.random.split(jax.random.fold_in(key, N * 1000 + T), 4)
        x = jax.random.normal(ks[0], (N, I, T), dtype=jnp.float32)
        W_h = jax.random.normal(ks[1], (H, H), dtype=jnp.float32) * scale
        W_ih = jax.random.normal(ks[2], (I, H), dtype=jnp.float32) * scale
        W_i = jax.random.normal(ks[3], (H, I), dtype=jnp.float32) * scale

        o, h = rnn_forward(x, W_h, W_ih, W_i, t_chunk=t_chunk)
        o = jax.block_until_ready(o)
        h = jax.block_until_ready(h)

        o_ref, h_ref = rnn_reference(x, W_h, W_ih, W_i)
        assert o.shape == (N, H) and h.shape == (N, H)
        assert jnp.allclose(o, o_ref, atol=1e-6, rtol=1e-5), f"output mismatch (N={N})"
        assert jnp.allclose(h, h_ref, atol=1e-6, rtol=1e-5), f"state mismatch (N={N})"

    # Single batch block, explicit t_chunk=4 -> grid=(1,4): exercises the
    # resident-state carry across time chunks.
    run_case(N=8, I=4, H=32, T=16, t_chunk=4)
    # Two batch blocks (leading 'parallel' axis) with auto-chosen chunking.
    run_case(N=16, I=4, H=32, T=16, t_chunk=None)

    print("KERNEL_OK")
</pallas_src>

<mosaic_0001>
module attributes {stable_mosaic.version = 11 : i64} {
  func.func @_rnn_recurrence_kernel(%arg0: i32, %arg1: i32, %arg2: memref<32x5xf32, #tpu.memory_space<vmem>>, %arg3: memref<5x32xf32, #tpu.memory_space<vmem>>, %arg4: memref<5x32xf32, #tpu.memory_space<vmem>>, %arg5: memref<8x32xf32, #tpu.memory_space<vmem>>, %arg6: memref<32x32xf32, #tpu.memory_space<vmem>>, %arg7: memref<32x32xf32, #tpu.memory_space<vmem>>) attributes {dimension_semantics = [#tpu.dimension_semantics<parallel>, #tpu.dimension_semantics<arbitrary>], iteration_bounds = array<i64: 1, 4>, scalar_prefetch = 0 : i64, scratch_operands = 2 : i64, tpu.core_type = #tpu.core_type<tc>, window_params = [{transform_indices = @transform_0, window_bounds = array<i64: 32, 5>}, {pipeline_mode = #tpu.pipeline_mode<synchronous>, transform_indices = @transform_1, window_bounds = array<i64: 5, 32>}, {pipeline_mode = #tpu.pipeline_mode<synchronous>, transform_indices = @transform_2, window_bounds = array<i64: 5, 32>}, {transform_indices = @transform_3, window_bounds = array<i64: 8, 32>}]} {
    %c0_i32 = arith.constant 0 : i32
    %0 = arith.cmpi eq, %arg1, %c0_i32 : i32
    %1 = arith.extui %0 : i1 to i32
    %c0_i32_0 = arith.constant 0 : i32
    %2 = arith.cmpi ne, %1, %c0_i32_0 : i32
    scf.if %2 {
      %cst_27 = arith.constant 0.000000e+00 : f32
      %44 = vector.broadcast %cst_27 : f32 to vector<8x32xf32>
      %c0_28 = arith.constant 0 : index
      %c0_29 = arith.constant 0 : index
      %45 = vector.load %arg5[%c0_28, %c0_29] : memref<8x32xf32, #tpu.memory_space<vmem>>, vector<8x32xf32>
      tpu.vector_store %arg5[%c0_28, %c0_29], %44 {strides = array<i32>} : memref<8x32xf32, #tpu.memory_space<vmem>>, vector<8x32xf32>,
    } else {
    }
    %c0 = arith.constant 0 : index
    %c0_1 = arith.constant 0 : index
    %3 = vector.load %arg2[%c0, %c0_1] : memref<32x5xf32, #tpu.memory_space<vmem>>, vector<32x5xf32>
    %c0_2 = arith.constant 0 : index
    %c0_3 = arith.constant 0 : index
    %4 = vector.load %arg3[%c0_2, %c0_3] : memref<5x32xf32, #tpu.memory_space<vmem>>, vector<5x32xf32>
    %cst = arith.constant dense<0.000000e+00> : vector<32x32xf32>
    %5 = tpu.matmul %3, %4, %cst {dimension_numbers = #tpu.dot_dimension_numbers<[1], [0], [0], [1], [0, 0, 1, 1], [], []>} : vector<32x5xf32>, vector<5x32xf32>, vector<32x32xf32> -> vector<32x32xf32>
    %c0_4 = arith.constant 0 : index
    %c0_5 = arith.constant 0 : index
    %6 = vector.load %arg6[%c0_4, %c0_5] : memref<32x32xf32, #tpu.memory_space<vmem>>, vector<32x32xf32>
    tpu.vector_store %arg6[%c0_4, %c0_5], %5 {strides = array<i32>} : memref<32x32xf32, #tpu.memory_space<vmem>>, vector<32x32xf32>,
    %c0_6 = arith.constant 0 : index
    %c0_7 = arith.constant 0 : index
    %7 = vector.load %arg4[%c0_6, %c0_7] : memref<5x32xf32, #tpu.memory_space<vmem>>, vector<5x32xf32>
    %cst_8 = arith.constant dense<0.000000e+00> : vector<32x32xf32>
    %8 = tpu.matmul %3, %7, %cst_8 {dimension_numbers = #tpu.dot_dimension_numbers<[1], [0], [0], [1], [0, 0, 1, 1], [], []>} : vector<32x5xf32>, vector<5x32xf32>, vector<32x32xf32> -> vector<32x32xf32>
    %c0_9 = arith.constant 0 : index
    %c0_10 = arith.constant 0 : index
    %9 = vector.load %arg7[%c0_9, %c0_10] : memref<32x32xf32, #tpu.memory_space<vmem>>, vector<32x32xf32>
    tpu.vector_store %arg7[%c0_9, %c0_10], %8 {strides = array<i32>} : memref<32x32xf32, #tpu.memory_space<vmem>>, vector<32x32xf32>,
    %c0_11 = arith.constant 0 : index
    %c0_12 = arith.constant 0 : index
    %10 = vector.load %arg5[%c0_11, %c0_12] : memref<8x32xf32, #tpu.memory_space<vmem>>, vector<8x32xf32>
    %c0_i32_13 = arith.constant 0 : i32
    %c8_i32 = arith.constant 8 : i32
    %11 = arith.muli %c0_i32_13, %c8_i32 : i32
    %12 = tpu.assume_multiple %11, 8 : i32
    %13 = arith.index_cast %12 : i32 to index
    %c0_14 = arith.constant 0 : index
    %14 = vector.load %arg6[%13, %c0_14] : memref<32x32xf32, #tpu.memory_space<vmem>>, vector<8x32xf32>
    %15 = arith.mulf %14, %10 : vector<8x32xf32>
    %16 = arith.index_cast %12 : i32 to index
    %c0_15 = arith.constant 0 : index
    %17 = vector.load %arg7[%16, %c0_15] : memref<32x32xf32, #tpu.memory_space<vmem>>, vector<8x32xf32>
    %18 = arith.addf %15, %17 : vector<8x32xf32>
    %c1_i32 = arith.constant 1 : i32
    %c8_i32_16 = arith.constant 8 : i32
    %19 = arith.muli %c1_i32, %c8_i32_16 : i32
    %20 = tpu.assume_multiple %19, 8 : i32
    %21 = arith.index_cast %20 : i32 to index
    %c0_17 = arith.constant 0 : index
    %22 = vector.load %arg6[%21, %c0_17] : memref<32x32xf32, #tpu.memory_space<vmem>>, vector<8x32xf32>
    %23 = arith.mulf %22, %18 : vector<8x32xf32>
    %24 = arith.index_cast %20 : i32 to index
    %c0_18 = arith.constant 0 : index
    %25 = vector.load %arg7[%24, %c0_18] : memref<32x32xf32, #tpu.memory_space<vmem>>, vector<8x32xf32>
    %26 = arith.addf %23, %25 : vector<8x32xf32>
    %c2_i32 = arith.constant 2 : i32
    %c8_i32_19 = arith.constant 8 : i32
    %27 = arith.muli %c2_i32, %c8_i32_19 : i32
    %28 = tpu.assume_multiple %27, 8 : i32
    %29 = arith.index_cast %28 : i32 to index
    %c0_20 = arith.constant 0 : index
    %30 = vector.load %arg6[%29, %c0_20] : memref<32x32xf32, #tpu.memory_space<vmem>>, vector<8x32xf32>
    %31 = arith.mulf %30, %26 : vector<8x32xf32>
    %32 = arith.index_cast %28 : i32 to index
    %c0_21 = arith.constant 0 : index
    %33 = vector.load %arg7[%32, %c0_21] : memref<32x32xf32, #tpu.memory_space<vmem>>, vector<8x32xf32>
    %34 = arith.addf %31, %33 : vector<8x32xf32>
    %c3_i32 = arith.constant 3 : i32
    %c8_i32_22 = arith.constant 8 : i32
    %35 = arith.muli %c3_i32, %c8_i32_22 : i32
    %36 = tpu.assume_multiple %35, 8 : i32
    %37 = arith.index_cast %36 : i32 to index
    %c0_23 = arith.constant 0 : index
    %38 = vector.load %arg6[%37, %c0_23] : memref<32x32xf32, #tpu.memory_space<vmem>>, vector<8x32xf32>
    %39 = arith.mulf %38, %34 : vector<8x32xf32>
    %40 = arith.index_cast %36 : i32 to index
    %c0_24 = arith.constant 0 : index
    %41 = vector.load %arg7[%40, %c0_24] : memref<32x32xf32, #tpu.memory_space<vmem>>, vector<8x32xf32>
    %42 = arith.addf %39, %41 : vector<8x32xf32>
    %c4_i32 = arith.constant 4 : i32
    %c0_25 = arith.constant 0 : index
    %c0_26 = arith.constant 0 : index
    %43 = vector.load %arg5[%c0_25, %c0_26] : memref<8x32xf32, #tpu.memory_space<vmem>>, vector<8x32xf32>
    tpu.vector_store %arg5[%c0_25, %c0_26], %42 {strides = array<i32>} : memref<8x32xf32, #tpu.memory_space<vmem>>, vector<8x32xf32>,
    return
  }
  func.func @transform_0(%arg0: i32, %arg1: i32) -> (i32, i32) {
    %c4_i32 = arith.constant 4 : i32
    %0 = arith.muli %arg0, %c4_i32 : i32
    %1 = arith.addi %0, %arg1 : i32
    %c0_i32 = arith.constant 0 : i32
    %c0_i32_0 = arith.constant 0 : i32
    return %1, %c0_i32 : i32, i32
  }
  func.func @transform_1(%arg0: i32, %arg1: i32) -> (i32, i32) {
    %c0_i32 = arith.constant 0 : i32
    %c0_i32_0 = arith.constant 0 : i32
    %c0_i32_1 = arith.constant 0 : i32
    return %c0_i32, %c0_i32_0 : i32, i32
  }
  func.func @transform_2(%arg0: i32, %arg1: i32) -> (i32, i32) {
    %c0_i32 = arith.constant 0 : i32
    %c0_i32_0 = arith.constant 0 : i32
    %c0_i32_1 = arith.constant 0 : i32
    return %c0_i32, %c0_i32_0 : i32, i32
  }
  func.func @transform_3(%arg0: i32, %arg1: i32) -> (i32, i32) {
    %c0_i32 = arith.constant 0 : i32
    %c0_i32_0 = arith.constant 0 : i32
    return %arg0, %c0_i32 : i32, i32
  }
}

</mosaic_0001>

<bundles_post_ra>
// kernel: tpu_custom_call.1
= control target key start
LH: loop header
LB: loop body
LE: loop exit
PB: predicated region body
PF: predicated region fallthrough
CT: control target
= control target key end

     0   :  { %8 = vsyncpa [#allocation5], 0  ;;  %s639_s12 = smov 0   ;;  %s641_s13 = smov 0   ;;  %s721_s0 = inlined_call_operand.vmem [shape: f32[128,5], index: 0, kind: input, shape index: {}]   ;;  %s722_s1 = inlined_call_operand.vmem [shape: f32[5,32], index: 1, kind: input, shape index: {}]   ;;  %s723_s2 = inlined_call_operand.vmem [shape: f32[5,32], index: 2, kind: input, shape index: {}]   ;;  %s724_s3 = inlined_call_operand.hbm [shape: f32[8,32], index: 3, kind: output, shape index: {}]  }
   0x1   :  { %s643_s14 = smov 0  }
   0x2 LB: > { %s484_s15 = sadd.s32 4294967295, %s615_s14   ;;  %s23_s16 = sadd.s32 1, %s611_s13  ;;  %s615_s14 = sphi %s643_s14, %s14_s14   ;;  %s611_s13 = sphi %s641_s13, %s727_s13   ;;  %s607_s12 = sphi %s639_s12, %s726_s12  }
   0x3   : > { %p24_p0 = scmp.ge.s32.totalorder %s23_s16, 4  ;;  %p487_p1 = scmp.ge.s32.totalorder %s615_s14, 1 }
   0x4   : > { %p159_p2 = scmp.lt.s32.totalorder %s615_s14, 5 }
   0x5   : > { %s729_s16 = smov (%p24_p0, %s23_s16), 0 }
   0x6   : > { %p160_p3 = pnand %p487_p1, %p159_p2 }
   0x7   : > { %s488_s17 = sshll.u32 (!%p160_p3), %s607_s12, 2  ;;  %p490_p5 = scmp.ne.s32.totalorder (!%p160_p3), %s607_s12, 0 }
   0x8   : > { %163 = sbr.rel (%p160_p3) target bundleno = 277 (0x115), region = 32  ;;  %p183_p4 = scmp.lt.s32.totalorder (!%p160_p3), %s488_s17, 15 }
   0xf   : > { %s731_s17 = smov (!%p183_p4, %s488_s17), 15  ;;  %193 = sbr.rel (%p490_p5) target bundleno = 22 (0x16), region = 36 }
  0x10   : > { %s489_s18 = sshll.u32 %s731_s17, 3  ;;  %vm194_vm0 = vcmask (!%p490_p5), 261120   ;;  %v617_v0 = vmov (!%p490_p5), 0.0  }
  0x11   : > { %s186_s21 = scalar_lea.vmem %s721_s0, %s489_s18  ;;  %195 = vst.msk [vmem:[#allocation4] sm:$0xff] (!%p490_p5), %vm194_vm0, %v617_v0 }
  0x16 PF: > { %v200_v1 = vld [vmem:[%s722_s1] sm:$0x1f]  ;;  %vm214_vm1 = vcmask 1044480   ;;  %vm201_vm2 = vcmask 39936   ;;  %v197_v3 = vld [vmem:[%s186_s21 + $0x8] sm:$0xff]  ;;  %v198_v5 = vld [vmem:[%s186_s21 + $0x10] sm:$0xff] }
  0x17   : > { %v196_v2 = vld [vmem:[%s186_s21] sm:$0xff]  ;;  %515 = vmatprep.subr.msk.mxu0 %vm214_vm1, %v200_v1  ;;  %v199_v6 = vld [vmem:[%s186_s21 + $0x18] sm:$0xff]  ;;  %vm303_vm3 = vcmask 261120   ;;  %s618_s26 = smov [#allocation4]   ;;  %p685_p6 = scmp.eq.s32.totalorder %s484_s15, 3 }
  0x18   : > { %517 = vmatprep.mubr.msk.f32.mxu0 %vm201_vm2, %v196_v2  ;;  %v308_v4 = vld [vmem:[%s723_s2] sm:$0x1f]  ;;  %516 = vmatpush3.msk.msra.mxu0 %vm214_vm1, %v200_v1  ;;  %s434_s27 = sshll.u32 %s618_s26, 4  ;;  %s435_s27 = int_to_ptr.vmem [resolvable:$true] %s434_s27 }
  0x19   : > { %523 = vmatprep.subr.msk.mxu1 %vm214_vm1, %v308_v4  ;;  %518 = vmatmul.mubr.msk.f32.vlgmr.msra.gmra.mrb[0].mxu0 %vm201_vm2, %v197_v3  ;;  %v401_v15 = vld [vmem:[#allocation4] sm:$0xff]  ;;  %s563_s29 = scalar_lea.vmem %s435_s27, 128  ;;  %p570_p10 = scmp.lt.s32.totalorder %s435_s27, %s435_s27 }
  0x1a   : > { %524 = vmatpush3.msk.msra.mxu1 %vm214_vm1, %v308_v4  ;;  %525 = vmatprep.mubr.msk.f32.mxu1 %vm201_vm2, %v196_v2  ;;  %p564_p7 = scmp.ne.s32.totalorder %s435_s27, %s563_s29  ;;  %p571_p11 = scmp.lt.s32.totalorder %s563_s29, %s563_s29 }
  0x1b   : > { %520 = vmatprep.mubr.msk.f32.mxu0 %vm201_vm2, %v198_v5  ;;  %526 = vmatmul.mubr.msk.f32.vlgmr.msra.gmra.mrb[0].mxu1 %vm201_vm2, %v197_v3 }
  0x1c   : > { %528 = vmatprep.mubr.msk.f32.mxu1 %vm201_vm2, %v198_v5  ;;  %p565_p8 = pnand %p564_p7, %p685_p6  ;;  %p572_p12 = por %p571_p11, %p570_p10 }
  0x1d   : > { %521 = vmatmul.mubr.msk.f32.gmra.mrb[2].mxu0 %vm201_vm2, %v199_v6 }
  0x1e   : > { %p566_p9 = pneg %p565_p8 }
  0x1f   : > { %529 = vmatmul.mubr.msk.f32.gmra.mrb[2].mxu1 %vm201_vm2, %v199_v6 }
  0x20   : > { %p573_p13 = pnand %p572_p12, %p566_p9 }
  0xec   : > { %v519_v7 = vpop.f32.mrb[0].mxu0 }
  0xed   : > { %305 = vst.msk [vmem:[#allocation2 + $0x8] sm:$0xff] %vm303_vm3, %v519_v7  ;;  %v284_v8 = vpop.f32.mrb[1].mxu0 }
  0xee   : > { %304 = vst.msk [vmem:[#allocation2] sm:$0xff] %vm303_vm3, %v284_v8  ;;  %v527_v9 = vpop.f32.mrb[0].mxu1 }
  0xef   : > { %398 = vst.msk [vmem:[#allocation3 + $0x8] sm:$0xff] %vm303_vm3, %v527_v9  ;;  %v378_v10 = vpop.f32.mrb[1].mxu1 }
  0xf0   : > { %397 = vst.msk [vmem:[#allocation3] sm:$0xff] %vm303_vm3, %v378_v10  ;;  %v522_v11 = vpop.f32.mrb[2].mxu0 }
  0xf1   : > { %307 = vst.msk [vmem:[#allocation2 + $0x18] sm:$0xff] %vm303_vm3, %v522_v11  ;;  %v294_v12 = vpop.f32.mrb[3].mxu0 }
  0xf2   : > { %306 = vst.msk [vmem:[#allocation2 + $0x10] sm:$0xff] %vm303_vm3, %v294_v12  ;;  %v530_v13 = vpop.f32.mrb[2].mxu1 }
  0xf3   : > { %400 = vst.msk [vmem:[#allocation3 + $0x18] sm:$0xff] %vm303_vm3, %v530_v13  ;;  %v388_v14 = vpop.f32.mrb[3].mxu1 }
  0xf4   : > { %399 = vst.msk [vmem:[#allocation3 + $0x10] sm:$0xff] %vm303_vm3, %v388_v14  ;;  %v407_v20 = vld [vmem:[#allocation2 + $0x8] sm:$0xff] }
  0xf5   : > { %v402_v16 = vld [vmem:[#allocation2] sm:$0xff] }
  0xf6   : > { %v403_v17 = vmul.f32 %v402_v16, %v401_v15  ;;  %v410_v22 = vld [vmem:[#allocation3 + $0x8] sm:$0xff] }
  0xf7   : > { %v404_v18 = vld [vmem:[#allocation3] sm:$0xff] }
  0xf8   : > { %v405_v19 = vadd.f32 %v404_v18, %v403_v17  ;;  %v419_v28 = vld [vmem:[#allocation2 + $0x18] sm:$0xff] }
  0xf9   : > { %v413_v23 = vld [vmem:[#allocation2 + $0x10] sm:$0xff] }
  0xfa   : > { %v408_v21 = vmul.f32 %v407_v20, %v405_v19  ;;  %v422_v30 = vld [vmem:[#allocation3 + $0x18] sm:$0xff] }
  0xfb   : > { %v416_v25 = vld [vmem:[#allocation3 + $0x10] sm:$0xff] }
  0xfc   : > { %v411_v24 = vadd.f32 %v410_v22, %v408_v21 }
  0xfe   : > { %v414_v26 = vmul.f32 %v413_v23, %v411_v24 }
 0x100   : > { %v417_v27 = vadd.f32 %v416_v25, %v414_v26 }
 0x102   : > { %v420_v29 = vmul.f32 %v419_v28, %v417_v27 }
 0x104   : > { %v423_v31 = vadd.f32 %v422_v30, %v420_v29 }
 0x106   : > { %424 = vst.msk [vmem:[#allocation4] sm:$0xff] %vm303_vm3, %v423_v31 }
 0x107   : > { %576 = shalt.err (!%p573_p13)
}
 0x108   : > { %s577_s5 = scalar_lea.hbm %s724_s3, 128 }
 0x109   : > { %p578_p0 = scmp.ne.s32.totalorder %s724_s3, %s577_s5  ;;  %p583_p3 = scmp.lt.u32.totalorder %s577_s5, %s724_s3 }
 0x10b   : > { %p579_p1 = pnand %p578_p0, %p685_p6 }
 0x10d   : > { %p580_p2 = pneg %p579_p1 }
 0x10f   : > { %p585_p4 = pnand %p583_p3, %p580_p2 }
 0x111   : > { %588 = shalt.err (!%p585_p4)
}
 0x112   : > { %532 = dma.vmem_to_hbm [thread:$0]  (%p685_p6), %s435_s27, 128, %s724_s3, [#allocation5]  }
 0x113   : > { %602 = dma.done.wait (%p685_p6), [#allocation5], 128  }
 0x114   : > { %604 = vsyncadd (%p685_p6), [#allocation5], 4294967168 }
 0x115 PF: > { %s14_s14 = sadd.s32 1, %s615_s14   ;;  %s726_s12 = smov %s611_s13 }
 0x116   : > { %p11_p5 = scmp.ge.s32.totalorder %s14_s14, 6   ;;  %s727_s13 = smov %s729_s16 }
 0x118   :  { %13 = sbr.rel (!%p11_p5) target bundleno = 2 (0x2), region = 70 }
 0x11f   :  { %447 = vsyncpa [#allocation5], 1 }
 0x120   :  { %449 = vsyncpa [#allocation5 + $0x1], 1 }

</bundles_post_ra>
